<compile_context>
chip_gen: v7x
topology: tpu7x:2x2x1
jax: 0.10.0
libtpu: 0.0.40
codegen_flags: <defaults>
</compile_context>

<pallas_src>
import functools

import jax
import jax.numpy as jnp
from jax.experimental import pallas as pl
from jax.experimental.pallas import tpu as pltpu

GAMMA = 2          # module default
ALPHA = 0.25       # module default
_LANES = 128
_ROW_ALIGN = 32    # int8 native tile is (32, 128)
_NPART = 2         # leading "parallel" grid axis: 2 TensorCores on v7x,
                   # serialized (and essentially free) on v5e/v6e.


def _round_up(x, m):
    return ((x + m - 1) // m) * m


def _vmem_cap_bytes():
    try:
        info = pltpu.get_tpu_info()
        return int(0.75 * getattr(info, "vmem_capacity_bytes", 64 * 1024 * 1024))
    except Exception:
        return 48 * 1024 * 1024


def _focal_loss_kernel(y_ref, t_ref, out_ref, acc_bce_ref, acc_t_ref, *, n, tm):
    # y_ref:  (tm, 128) f32 VMEM, precomputed logit difference x1 - x0
    # t_ref:  (tm, 128) int8 VMEM, labels in {0,1} (0 in padding)
    # out_ref:(1, 2, 128) f32 VMEM block of the (NPART, 2, 128) partials output
    c = pl.program_id(0)                     # partial / TensorCore index
    s = pl.program_id(1)                     # reduction step
    nsteps = pl.num_programs(1)

    @pl.when(s == 0)
    def _init():
        acc_bce_ref[...] = jnp.zeros_like(acc_bce_ref)
        acc_t_ref[...] = jnp.zeros_like(acc_t_ref)

    y = y_ref[...]
    t = t_ref[...].astype(jnp.float32)

    # p1 = softmax([x0, x1], class-axis)[1] = sigmoid(y), tanh form (1 EUP op).
    p1 = 0.5 * (jnp.tanh(0.5 * y) + 1.0)

    # binary_cross_entropy_with_logits(input=p1, target=t); since p1 in (0,1),
    # max(p1, 0) == p1 and |p1| == p1.
    bce_elem = p1 * (1.0 - t) + jnp.log(1.0 + jnp.exp(-p1))

    # Mask the padded tail (row-major flattened index >= n contributes 0).
    row = jax.lax.broadcasted_iota(jnp.int32, (tm, _LANES), 0)
    col = jax.lax.broadcasted_iota(jnp.int32, (tm, _LANES), 1)
    flat = ((c * nsteps + s) * tm + row) * _LANES + col
    bce_elem = jnp.where(flat < n, bce_elem, 0.0)

    acc_bce_ref[...] += bce_elem
    acc_t_ref[...] += t                      # padded targets are 0 -> no mask

    @pl.when(s == nsteps - 1)
    def _finalize():
        sum_bce = jnp.sum(acc_bce_ref[...])
        sum_t = jnp.sum(acc_t_ref[...])
        sel = jax.lax.broadcasted_iota(jnp.int32, (1, 2, _LANES), 1)
        # Row 0 carries this partial's sum(BCE), row 1 carries sum(t).
        out_ref[...] = jnp.where(sel == 0, sum_bce, sum_t)


@functools.partial(jax.jit, static_argnames=("block_rows",))
def weighted_focal_loss(inputs, targets, alpha=None, block_rows=2048):
    """inputs: (N, 2) float logits, targets: (N,) int {0,1}. Returns scalar f32."""
    if alpha is None:
        alpha = jnp.array([ALPHA, 1.0 - ALPHA], dtype=jnp.float32)
    alpha = jnp.asarray(alpha, jnp.float32)

    n = inputs.shape[0]
    rows_min = max(-(-n // _LANES), 1)                       # ceil(n / 128)
    tm = min(_round_up(block_rows, _ROW_ALIGN), _round_up(rows_min, _ROW_ALIGN))
    steps = -(-rows_min // (_NPART * tm))                    # ceil
    rows = _NPART * steps * tm
    pad = rows * _LANES - n

    # Lane-dense relayout of the precomputed logit difference; under jit the
    # cast + subtract + pad + reshape fuse into one copy feeding the kernel.
    x = jnp.asarray(inputs, jnp.float32)
    y = jnp.pad(x[:, 1] - x[:, 0], (0, pad)).reshape(rows, _LANES)
    t = jnp.pad(jnp.asarray(targets, jnp.int8), (0, pad)).reshape(rows, _LANES)

    # VMEM: double-buffered y (f32) + t (int8) tiles + 2 f32 accumulators,
    # with headroom, capped at 75% of this chip's physical VMEM.
    need = _LANES * tm * (2 * 5 + 8)
    vmem_limit = min(max(2 * need, 16 * 1024 * 1024), _vmem_cap_bytes())

    partials = pl.pallas_call(
        functools.partial(_focal_loss_kernel, n=n, tm=tm),
        out_shape=jax.ShapeDtypeStruct((_NPART, 2, _LANES), jnp.float32),
        grid=(_NPART, steps),
        in_specs=[
            pl.BlockSpec((tm, _LANES), lambda c, s: (c * steps + s, 0)),  # y
            pl.BlockSpec((tm, _LANES), lambda c, s: (c * steps + s, 0)),  # targets
        ],
        out_specs=pl.BlockSpec((1, 2, _LANES), lambda c, s: (c, 0, 0)),
        scratch_shapes=[pltpu.VMEM((tm, _LANES), jnp.float32),   # bce accumulator
                        pltpu.VMEM((tm, _LANES), jnp.float32)],  # target accumulator
        compiler_params=pltpu.CompilerParams(
            dimension_semantics=("parallel", "arbitrary"),
            vmem_limit_bytes=vmem_limit),
    )(y, t)

    # Scalar finalize in the wrapper (needs the global sums anyway).
    sum_bce = jnp.sum(partials[:, 0, 0])
    sum_t = jnp.sum(partials[:, 1, 0])
    a0 = alpha[0]
    a1 = alpha[1]
    mean_at = a0 + (a1 - a0) * (sum_t / n)       # mean_i(alpha[t_i])
    pt = jnp.exp(-sum_bce)
    return mean_at * (1.0 - pt) ** GAMMA * sum_bce


def _reference(inputs, targets, alpha):
    # Pure-JAX mirror of the PyTorch forward.
    p = jax.nn.softmax(jnp.asarray(inputs, jnp.float32), axis=1)[:, 1]
    t = jnp.asarray(targets, jnp.float32)
    bce = jnp.sum(jnp.maximum(p, 0.0) - p * t + jnp.log1p(jnp.exp(-jnp.abs(p))))
    at = alpha[jnp.asarray(targets, jnp.int32)]
    pt = jnp.exp(-bce)
    return jnp.mean(at * (1.0 - pt) ** GAMMA * bce)


if __name__ == "__main__":
    key = jax.random.PRNGKey(0)
    k1, k2, k3, k4 = jax.random.split(key, 4)
    alpha = jnp.array([ALPHA, 1.0 - ALPHA], dtype=jnp.float32)

    # Module-scale small case: N=8 two-class logits (single step per partial).
    n_small = 8
    inp_s = jax.random.normal(k1, (n_small, 2), dtype=jnp.float32)
    tgt_s = jax.random.bernoulli(k2, 0.5, (n_small,)).astype(jnp.int32)
    loss_s = weighted_focal_loss(inp_s, tgt_s, alpha)
    jax.block_until_ready(loss_s)
    ref_s = _reference(inp_s, tgt_s, alpha)
    assert jnp.allclose(loss_s, ref_s, rtol=1e-5, atol=1e-6), (loss_s, ref_s)

    # Larger case exercising the multi-step reduction grid, the 2-way partial
    # split and the padding mask (tile kept >= 1024 rows per perf review).
    n_big = 300_000
    inp_b = jax.random.normal(k3, (n_big, 2), dtype=jnp.float32)
    tgt_b = jax.random.bernoulli(k4, 0.5, (n_big,)).astype(jnp.int32)
    loss_b = weighted_focal_loss(inp_b, tgt_b, alpha, block_rows=1024)
    jax.block_until_ready(loss_b)
    ref_b = _reference(inp_b, tgt_b, alpha)
    assert jnp.allclose(loss_b, ref_b, rtol=1e-4, atol=1e-5), (loss_b, ref_b)

    print("KERNEL_OK")
</pallas_src>

<mosaic_0001>
module attributes {stable_mosaic.version = 11 : i64} {
  func.func @_focal_loss_kernel(%arg0: i32, %arg1: i32, %arg2: memref<32x128xf32, #tpu.memory_space<vmem>>, %arg3: memref<32x128xi8, #tpu.memory_space<vmem>>, %arg4: memref<1x2x128xf32, #tpu.memory_space<vmem>>, %arg5: memref<32x128xf32, #tpu.memory_space<vmem>>, %arg6: memref<32x128xf32, #tpu.memory_space<vmem>>) attributes {dimension_semantics = [#tpu.dimension_semantics<parallel>, #tpu.dimension_semantics<arbitrary>], iteration_bounds = array<i64: 2, 1>, scalar_prefetch = 0 : i64, scratch_operands = 2 : i64, tpu.core_type = #tpu.core_type<tc>, window_params = [{transform_indices = @transform_0, window_bounds = array<i64: 32, 128>}, {transform_indices = @transform_1, window_bounds = array<i64: 32, 128>}, {transform_indices = @transform_2, window_bounds = array<i64: 1, 2, 128>}]} {
    %c0_i32 = arith.constant 0 : i32
    %0 = arith.cmpi eq, %arg1, %c0_i32 : i32
    %1 = arith.extui %0 : i1 to i32
    %c0_i32_0 = arith.constant 0 : i32
    %2 = arith.cmpi ne, %1, %c0_i32_0 : i32
    scf.if %2 {
      %cst_20 = arith.constant 0.000000e+00 : f32
      %46 = vector.broadcast %cst_20 : f32 to vector<32x128xf32>
      %c0_21 = arith.constant 0 : index
      %c0_22 = arith.constant 0 : index
      %47 = vector.load %arg5[%c0_21, %c0_22] : memref<32x128xf32, #tpu.memory_space<vmem>>, vector<32x128xf32>
      tpu.vector_store %arg5[%c0_21, %c0_22], %46 {strides = array<i32>} : memref<32x128xf32, #tpu.memory_space<vmem>>, vector<32x128xf32>,
      %cst_23 = arith.constant 0.000000e+00 : f32
      %48 = vector.broadcast %cst_23 : f32 to vector<32x128xf32>
      %c0_24 = arith.constant 0 : index
      %c0_25 = arith.constant 0 : index
      %49 = vector.load %arg6[%c0_24, %c0_25] : memref<32x128xf32, #tpu.memory_space<vmem>>, vector<32x128xf32>
      tpu.vector_store %arg6[%c0_24, %c0_25], %48 {strides = array<i32>} : memref<32x128xf32, #tpu.memory_space<vmem>>, vector<32x128xf32>,
    } else {
    }
    %c0 = arith.constant 0 : index
    %c0_1 = arith.constant 0 : index
    %3 = vector.load %arg2[%c0, %c0_1] : memref<32x128xf32, #tpu.memory_space<vmem>>, vector<32x128xf32>
    %c0_2 = arith.constant 0 : index
    %c0_3 = arith.constant 0 : index
    %4 = vector.load %arg3[%c0_2, %c0_3] : memref<32x128xi8, #tpu.memory_space<vmem>>, vector<32x128xi8>
    %5 = arith.sitofp %4 : vector<32x128xi8> to vector<32x128xf32>
    %cst = arith.constant 5.000000e-01 : f32
    %6 = vector.broadcast %cst : f32 to vector<32x128xf32>
    %7 = arith.mulf %6, %3 : vector<32x128xf32>
    %8 = math.tanh %7 : vector<32x128xf32>
    %cst_4 = arith.constant 1.000000e+00 : f32
    %9 = vector.broadcast %cst_4 : f32 to vector<32x128xf32>
    %10 = arith.addf %8, %9 : vector<32x128xf32>
    %cst_5 = arith.constant 5.000000e-01 : f32
    %11 = vector.broadcast %cst_5 : f32 to vector<32x128xf32>
    %12 = arith.mulf %11, %10 : vector<32x128xf32>
    %cst_6 = arith.constant 1.000000e+00 : f32
    %13 = vector.broadcast %cst_6 : f32 to vector<32x128xf32>
    %14 = arith.subf %13, %5 : vector<32x128xf32>
    %15 = arith.mulf %12, %14 : vector<32x128xf32>
    %cst_7 = arith.constant 0.000000e+00 : f32
    %16 = vector.broadcast %cst_7 : f32 to vector<32x128xf32>
    %17 = arith.subf %16, %12 : vector<32x128xf32>
    %18 = math.exp %17 : vector<32x128xf32>
    %cst_8 = arith.constant 1.000000e+00 : f32
    %19 = vector.broadcast %cst_8 : f32 to vector<32x128xf32>
    %20 = arith.addf %19, %18 : vector<32x128xf32>
    %21 = math.log %20 : vector<32x128xf32>
    %22 = arith.addf %15, %21 : vector<32x128xf32>
    %23 = tpu.iota {dimensions = array<i32: 0>} : vector<32x128xi32>
    %24 = tpu.iota {dimensions = array<i32: 1>} : vector<32x128xi32>
    %c1_i32 = arith.constant 1 : i32
    %25 = arith.muli %arg0, %c1_i32 : i32
    %26 = arith.addi %25, %arg1 : i32
    %c32_i32 = arith.constant 32 : i32
    %27 = arith.muli %26, %c32_i32 : i32
    %28 = vector.broadcast %27 : i32 to vector<32x128xi32>
    %29 = arith.addi %28, %23 : vector<32x128xi32>
    %c128_i32 = arith.constant 128 : i32
    %30 = vector.broadcast %c128_i32 : i32 to vector<32x128xi32>
    %31 = arith.muli %29, %30 : vector<32x128xi32>
    %32 = arith.addi %31, %24 : vector<32x128xi32>
    %c8_i32 = arith.constant 8 : i32
    %33 = vector.broadcast %c8_i32 : i32 to vector<32x128xi32>
    %34 = arith.cmpi slt, %32, %33 : vector<32x128xi32>
    %cst_9 = arith.constant 0.000000e+00 : f32
    %35 = vector.broadcast %cst_9 : f32 to vector<32x128xf32>
    %36 = arith.select %34, %22, %35 : vector<32x128xi1>, vector<32x128xf32>
    %c0_10 = arith.constant 0 : index
    %c0_11 = arith.constant 0 : index
    %37 = vector.load %arg5[%c0_10, %c0_11] : memref<32x128xf32, #tpu.memory_space<vmem>>, vector<32x128xf32>
    %38 = arith.addf %37, %36 : vector<32x128xf32>
    %c0_12 = arith.constant 0 : index
    %c0_13 = arith.constant 0 : index
    %39 = vector.load %arg5[%c0_12, %c0_13] : memref<32x128xf32, #tpu.memory_space<vmem>>, vector<32x128xf32>
    tpu.vector_store %arg5[%c0_12, %c0_13], %38 {strides = array<i32>} : memref<32x128xf32, #tpu.memory_space<vmem>>, vector<32x128xf32>,
    %c0_14 = arith.constant 0 : index
    %c0_15 = arith.constant 0 : index
    %40 = vector.load %arg6[%c0_14, %c0_15] : memref<32x128xf32, #tpu.memory_space<vmem>>, vector<32x128xf32>
    %41 = arith.addf %40, %5 : vector<32x128xf32>
    %c0_16 = arith.constant 0 : index
    %c0_17 = arith.constant 0 : index
    %42 = vector.load %arg6[%c0_16, %c0_17] : memref<32x128xf32, #tpu.memory_space<vmem>>, vector<32x128xf32>
    tpu.vector_store %arg6[%c0_16, %c0_17], %41 {strides = array<i32>} : memref<32x128xf32, #tpu.memory_space<vmem>>, vector<32x128xf32>,
    %c0_i32_18 = arith.constant 0 : i32
    %43 = arith.cmpi eq, %arg1, %c0_i32_18 : i32
    %44 = arith.extui %43 : i1 to i32
    %c0_i32_19 = arith.constant 0 : i32
    %45 = arith.cmpi ne, %44, %c0_i32_19 : i32
    scf.if %45 {
      %c0_20 = arith.constant 0 : index
      %c0_21 = arith.constant 0 : index
      %46 = vector.load %arg5[%c0_20, %c0_21] : memref<32x128xf32, #tpu.memory_space<vmem>>, vector<32x128xf32>
      %47 = vector.shape_cast %46 : vector<32x128xf32> to vector<1x32x128xf32>
      %cst_22 = arith.constant dense<0.000000e+00> : vector<1xf32>
      %48 = vector.multi_reduction <add>, %47, %cst_22 [1, 2] : vector<1x32x128xf32> to vector<1xf32>
      %49 = vector.shape_cast %48 : vector<1xf32> to vector<1x1x1xf32>
      %50 = vector.extract %49[0, 0, 0] : f32 from vector<1x1x1xf32>
      %c0_23 = arith.constant 0 : index
      %c0_24 = arith.constant 0 : index
      %51 = vector.load %arg6[%c0_23, %c0_24] : memref<32x128xf32, #tpu.memory_space<vmem>>, vector<32x128xf32>
      %52 = vector.shape_cast %51 : vector<32x128xf32> to vector<1x32x128xf32>
      %cst_25 = arith.constant dense<0.000000e+00> : vector<1xf32>
      %53 = vector.multi_reduction <add>, %52, %cst_25 [1, 2] : vector<1x32x128xf32> to vector<1xf32>
      %54 = vector.shape_cast %53 : vector<1xf32> to vector<1x1x1xf32>
      %55 = vector.extract %54[0, 0, 0] : f32 from vector<1x1x1xf32>
      %56 = tpu.iota {dimensions = array<i32: 1>} : vector<1x2x128xi32>
      %c0_i32_26 = arith.constant 0 : i32
      %57 = vector.broadcast %c0_i32_26 : i32 to vector<1x2x128xi32>
      %58 = arith.cmpi eq, %56, %57 : vector<1x2x128xi32>
      %59 = vector.broadcast %50 : f32 to vector<1x2x128xf32>
      %60 = vector.broadcast %55 : f32 to vector<1x2x128xf32>
      %61 = arith.select %58, %59, %60 : vector<1x2x128xi1>, vector<1x2x128xf32>
      %c0_27 = arith.constant 0 : index
      %c0_28 = arith.constant 0 : index
      %c0_29 = arith.constant 0 : index
      %62 = vector.load %arg4[%c0_27, %c0_28, %c0_29] : memref<1x2x128xf32, #tpu.memory_space<vmem>>, vector<1x2x128xf32>
      tpu.vector_store %arg4[%c0_27, %c0_28, %c0_29], %61 {strides = array<i32>} : memref<1x2x128xf32, #tpu.memory_space<vmem>>, vector<1x2x128xf32>,
    } else {
    }
    return
  }
  func.func @transform_0(%arg0: i32, %arg1: i32) -> (i32, i32) {
    %c1_i32 = arith.constant 1 : i32
    %0 = arith.muli %arg0, %c1_i32 : i32
    %1 = arith.addi %0, %arg1 : i32
    %c0_i32 = arith.constant 0 : i32
    %c0_i32_0 = arith.constant 0 : i32
    return %1, %c0_i32 : i32, i32
  }
  func.func @transform_1(%arg0: i32, %arg1: i32) -> (i32, i32) {
    %c1_i32 = arith.constant 1 : i32
    %0 = arith.muli %arg0, %c1_i32 : i32
    %1 = arith.addi %0, %arg1 : i32
    %c0_i32 = arith.constant 0 : i32
    %c0_i32_0 = arith.constant 0 : i32
    return %1, %c0_i32 : i32, i32
  }
  func.func @transform_2(%arg0: i32, %arg1: i32) -> (i32, i32, i32) {
    %c0_i32 = arith.constant 0 : i32
    %c0_i32_0 = arith.constant 0 : i32
    %c0_i32_1 = arith.constant 0 : i32
    return %arg0, %c0_i32, %c0_i32_0 : i32, i32, i32
  }
}

</mosaic_0001>

<bundles_post_ra>
// kernel: weighted_focal_loss.1
= control target key start
LH: loop header
LB: loop body
LE: loop exit
PB: predicated region body
PF: predicated region fallthrough
CT: control target
= control target key end

     0   :  { %s534_s9 = smov 0   ;;  %s536_s10 = smov 0   ;;  %s599_s0 = inlined_call_operand.vmem [shape: f32[64,128], index: 0, kind: input, shape index: {}]   ;;  %s600_s1 = inlined_call_operand.vmem [shape: s8[64,128], index: 1, kind: input, shape index: {}]   ;;  %s601_s2 = inlined_call_operand.vmem [shape: f32[2,2,128], index: 2, kind: output, shape index: {}]  }
   0x1   :  { %s538_s11 = smov 0  }
   0x2 LB: > { %s24_s12 = sadd.s32 1, %s513_s10  ;;  %p435_p0 = scmp.ge.s32.totalorder %s517_s11, 1  ;;  %s517_s11 = sphi %s538_s11, %s12_s11   ;;  %s513_s10 = sphi %s536_s10, %s603_s10   ;;  %s509_s9 = sphi %s534_s9, %s602_s9  }
   0x3   : > { %p26_p1 = scmp.ge.s32.totalorder %s24_s12, 2  ;;  %p142_p2 = scmp.lt.s32.totalorder %s517_s11, 3 }
   0x5   : > { %s605_s12 = smov (%p26_p1, %s24_s12), 0  ;;  %p143_p3 = pnand %p435_p0, %p142_p2 }
   0x6   : > { %s436_s13 = sshll.u32 (!%p143_p3), %s509_s9, 2  ;;  %p178_p5 = scmp.lt.s32.totalorder (!%p143_p3), %s509_s9, 1  ;;  %v264_v28 = vlaneseq (!%p143_p3) }
   0x7   : > { %146 = sbr.rel (%p143_p3) target bundleno = 286 (0x11e), region = 28  ;;  %p171_p4 = scmp.lt.s32.totalorder (!%p143_p3), %s436_s13, 7 }
   0x8   : > { %v575_v29 = vshrl.u32 (!%p143_p3), %v264_v28, 7  ;;  %s440_s23 = sshll.u32 (!%p143_p3), %s509_s9, 5  ;;  %v270_v55 = vand.u32 (!%p143_p3), 127, %v264_v28 }
   0x9   : > { %v273_v34 = vstv (!%p143_p3), %s440_s23 }
   0xa   : > { %v266_v33 = vadd.s32 (!%p143_p3), 8, %v575_v29  ;;  %v267_v38 = vadd.s32 (!%p143_p3), 16, %v575_v29  ;;  %v268_v42 = vadd.s32 (!%p143_p3), 24, %v575_v29  ;;  %v274_v46 = vadd.s32 (!%p143_p3), %v273_v34, %v575_v29 }
   0xb   : > { %vm353_vm4 = vcmp.eq.s32.totalorder (!%p143_p3), %v575_v29, 0 }
   0xc   : > { %v275_v49 = vadd.s32 (!%p143_p3), %v273_v34, %v266_v33  ;;  %v276_v51 = vadd.s32 (!%p143_p3), %v273_v34, %v267_v38  ;;  %v277_v53 = vadd.s32 (!%p143_p3), %v273_v34, %v268_v42  ;;  %v278_v56 = vmul.u32 (!%p143_p3), 128, %v274_v46 }
   0xe   : > { %s607_s13 = smov (!%p171_p4, %s436_s13), 7  ;;  %v279_v58 = vmul.u32 128, %v275_v49  ;;  %v280_v60 = vmul.u32 128, %v276_v51 }
   0xf   : > { %s437_s14 = sshll.u32 %s607_s13, 3  ;;  %v281_v62 = vmul.u32 128, %v277_v53 }
  0x10   : > { %s174_s17 = scalar_lea.vmem %s599_s0, %s437_s14 }
  0x11   : > { %v199_v0 = vld [vmem:[%s174_s17] sm:$0xff]  ;;  %v200_v1 = vld [vmem:[%s174_s17 + $0x8] sm:$0xff]  ;;  %v201_v2 = vld [vmem:[%s174_s17 + $0x10] sm:$0xff]  ;;  %s564_s18 = scalar_select %p178_p5, %s509_s9, 1 }
  0x12   : > { %v202_v3 = vld [vmem:[%s174_s17 + $0x18] sm:$0xff]  ;;  %v212_v4 = vmul.f32 0.5, %v199_v0  ;;  %v213_v5 = vmul.f32 0.5, %v200_v1  ;;  %v214_v6 = vmul.f32 0.5, %v201_v2  ;;  %v282_v0 = vadd.s32 %v278_v56, %v270_v55 }
  0x13   : > { %v215_v7 = vmul.f32 0.5, %v202_v3  ;;  %s438_s19 = sshll.u32 %s564_s18, 3  ;;  %v283_v2 = vadd.s32 %v279_v58, %v270_v55  ;;  %s439_s24 = sshll.u32 %s564_s18, 1 }
  0x14   : > { %471 = vtanh.f32 %v212_v4  ;;  %s181_s22 = scalar_lea.vmem %s600_s1, %s438_s19  ;;  %vm286_vm0 = vcmp.lt.s32.totalorder %v282_v0, 8  ;;  %s186_s28 = scalar_lea.vmem %s601_s2, %s439_s24 }
  0x15   : > { %473 = vtanh.f32 %v213_v5  ;;  %v203_v30 = vld [vmem:[%s181_s22] sm:$0xff]  ;;  %v284_v5 = vadd.s32 %v280_v60, %v270_v55  ;;  %vm287_vm1 = vcmp.lt.s32.totalorder %v283_v2, 8 }
  0x16   : > { %475 = vtanh.f32 %v214_v6  ;;  %v204_v32 = vunpack.c.0.s8 %v203_v30  ;;  %v205_v36 = vunpack.c.1.s8 %v203_v30  ;;  %v206_v40 = vunpack.c.2.s8 %v203_v30 }
  0x17   : > { %477 = vtanh.f32 %v215_v7  ;;  %v207_v44 = vunpack.c.3.s8 %v203_v30  ;;  %vm288_vm2 = vcmp.lt.s32.totalorder %v284_v5, 8 }
  0x18   : > { %v208_v47 = vcvt.s32.f32 %v204_v32  ;;  %v209_v50 = vcvt.s32.f32 %v205_v36  ;;  %v210_v52 = vcvt.s32.f32 %v206_v40 }
  0x19   : > { %v211_v54 = vcvt.s32.f32 %v207_v44 }
  0x1a   : > { %v228_v57 = vsub.f32 1.0, %v208_v47  ;;  %v229_v59 = vsub.f32 1.0, %v209_v50  ;;  %v230_v61 = vsub.f32 1.0, %v210_v52 }
  0x1b   : > { %v231_v63 = vsub.f32 1.0, %v211_v54 }
  0x1e   : > { %v472_v8 = vpop.eup %471 }
  0x1f   : > { %v474_v9 = vpop.eup %473  ;;  %v220_v10 = vadd.f32 1.0, %v472_v8 }
  0x20   : > { %v476_v11 = vpop.eup %475  ;;  %v221_v12 = vadd.f32 1.0, %v474_v9  ;;  %v285_v9 = vadd.s32 %v281_v62, %v270_v55 }
  0x21   : > { %v478_v13 = vpop.eup %477  ;;  %v222_v14 = vadd.f32 1.0, %v476_v11  ;;  %v224_v15 = vmul.f32 0.5, %v220_v10 }
  0x22   : > { %v223_v16 = vadd.f32 1.0, %v478_v13  ;;  %v559_v17 = vmul.f32 0.5, %v221_v12  ;;  %vm289_vm3 = vcmp.lt.s32.totalorder %v285_v9, 8 }
  0x23   : > { %v561_v18 = vmul.f32 0.5, %v222_v14  ;;  %v236_v19 = vsub.f32 0.0, %v224_v15  ;;  %v232_v1 = vmul.f32 %v228_v57, %v224_v15 }
  0x24   : > { %v566_v20 = vmul.f32 0.5, %v223_v16  ;;  %v237_v21 = vsub.f32 0.0, %v559_v17  ;;  %v233_v4 = vmul.f32 %v229_v59, %v559_v17 }
  0x25   : > { %v238_v22 = vsub.f32 0.0, %v561_v18  ;;  %v240_v23 = vmul.f32 1.442695, %v236_v19  ;;  %v234_v7 = vmul.f32 %v230_v61, %v561_v18 }
  0x26   : > { %v239_v24 = vsub.f32 0.0, %v566_v20  ;;  %v242_v25 = vmul.f32 1.442695, %v237_v21  ;;  %v235_v11 = vmul.f32 %v231_v63, %v566_v20 }
  0x27   : > { %479 = vpow2.f32 %v240_v23  ;;  %v244_v26 = vmul.f32 1.442695, %v238_v22  ;;  %v341_v22 = vadd.f32 %v209_v50, %v208_v47 }
  0x28   : > { %481 = vpow2.f32 %v242_v25  ;;  %v246_v27 = vmul.f32 1.442695, %v239_v24 }
  0x29   : > { %483 = vpow2.f32 %v244_v26  ;;  %v342_v20 = vadd.f32 %v341_v22, %v210_v52 }
  0x2a   : > { %485 = vpow2.f32 %v246_v27 }
  0x2b   : > { %v343_v30 = vadd.f32 %v342_v20, %v211_v54 }
  0x31   : > { %v480_v31 = vpop.eup %479 }
  0x32   : > { %v482_v35 = vpop.eup %481  ;;  %v248_v37 = vadd.f32 1.0, %v480_v31 }
  0x33   : > { %v484_v39 = vpop.eup %483  ;;  %v249_v41 = vadd.f32 1.0, %v482_v35 }
  0x34   : > { %v486_v43 = vpop.eup %485  ;;  %v250_v45 = vadd.f32 1.0, %v484_v39  ;;  %487 = vlog2.f32 %v248_v37 }
  0x35   : > { %v251_v48 = vadd.f32 1.0, %v486_v43  ;;  %489 = vlog2.f32 %v249_v41 }
  0x36   : > { %491 = vlog2.f32 %v250_v45 }
  0x37   : > { %493 = vlog2.f32 %v251_v48 }
  0x3e   : > { %v488_v3 = vpop.eup %487 }
  0x3f   : > { %v490_v6 = vpop.eup %489  ;;  %v253_v8 = vmul.f32 0.6931472, %v488_v3 }
  0x40   : > { %v492_v10 = vpop.eup %491  ;;  %v255_v12 = vmul.f32 0.6931472, %v490_v6 }
  0x41   : > { %v494_v13 = vpop.eup %493  ;;  %v257_v14 = vmul.f32 0.6931472, %v492_v10  ;;  %v260_v16 = vadd.f32 %v253_v8, %v232_v1 }
  0x42   : > { %v259_v15 = vmul.f32 0.6931472, %v494_v13  ;;  %v261_v19 = vadd.f32 %v255_v12, %v233_v4 }
  0x43   : > { %v262_v21 = vadd.f32 %v257_v14, %v234_v7  ;;  %v290_v17 = vsel %vm286_vm0, %v260_v16, 0.0 }
  0x44   : > { %v263_v23 = vadd.f32 %v259_v15, %v235_v11  ;;  %v291_v18 = vsel %vm287_vm1, %v261_v19, 0.0 }
  0x45   : > { %v292_v24 = vsel %vm288_vm2, %v262_v21, 0.0  ;;  %v325_v25 = vadd.f32 %v291_v18, %v290_v17 }
  0x46   : > { %v293_v26 = vsel %vm289_vm3, %v263_v23, 0.0 }
  0x47   : > { %v326_v27 = vadd.f32 %v325_v25, %v292_v24 }
  0x49   : > { %v327_v28 = vadd.f32 %v326_v27, %v293_v26 }
  0x4b   : > { %328 = vadd.xlane.f32.xlu0 %v327_v28 }
  0x4f   : > { %344 = vadd.xlane.f32.xlu0 %v343_v30 }
  0xd8   : > { %v329_v31 = vpop.xlane.xlu0 %328 }
  0xd9   : > { %v330_v32 = vrot.slane %v329_v31, 4 }
  0xdb   : > { %v331_v33 = vadd.f32 %v330_v32, %v329_v31 }
  0xdc   : > { %v345_v34 = vpop.xlane.xlu0 %344 }
  0xdd   : > { %v332_v35 = vrot.slane %v331_v33, 2  ;;  %v346_v36 = vrot.slane %v345_v34, 4 }
  0xdf   : > { %v347_v37 = vadd.f32 %v346_v36, %v345_v34  ;;  %v333_v38 = vadd.f32 %v332_v35, %v331_v33 }
  0xe1   : > { %v348_v39 = vrot.slane %v347_v37, 2  ;;  %v334_v40 = vrot.slane %v333_v38, 1 }
  0xe3   : > { %v349_v41 = vadd.f32 %v348_v39, %v347_v37  ;;  %v335_v42 = vadd.f32 %v334_v40, %v333_v38 }
  0xe5   : > { %443 = vpush %v335_v42  ;;  %v350_v43 = vrot.slane %v349_v41, 1 }
  0xe7   : > { %v351_v44 = vadd.f32 %v350_v43, %v349_v41 }
  0xe9   : > { %445 = vpush %v351_v44 }
 0x116   : > { %s444_s25 = spop %443 }
 0x117   : > { %v354_v45 = vstv %s444_s25 }
 0x11a   : > { %s446_s29 = spop %445 }
 0x11b   : > { %v355_v46 = vstv %s446_s29 }
 0x11c   : > { %v356_v47 = vsel %vm353_vm4, %v354_v45, %v355_v46 }
 0x11d   : > { %357 = vst [vmem:[%s186_s28] sm:$0x3] %v356_v47 }
 0x11e PF: > { %s12_s11 = sadd.s32 1, %s517_s11   ;;  %s602_s9 = smov %s513_s10 }
 0x11f   : > { %p9_p6 = scmp.ge.s32.totalorder %s12_s11, 4   ;;  %s603_s10 = smov %s605_s12 }
 0x121   :  { %11 = sbr.rel (!%p9_p6) target bundleno = 2 (0x2), region = 69 }

</bundles_post_ra>
